<compile_context>
chip_gen: v7x
topology: tpu7x:2x2x1
jax: 0.10.0
libtpu: 0.0.40
codegen_flags: <defaults>
</compile_context>

<pallas_src>
import functools

import jax
import jax.numpy as jnp
from jax.experimental import pallas as pl
from jax.experimental.pallas import tpu as pltpu

IN_FEATURES = 10
OUT_FEATURES = 5


def _dual_linear_kernel(x_ref, y_ref, wt_ref, b2_ref, o_ref):
    # x_ref, y_ref: (B, 10); wt_ref: (10, 5) = W^T; b2_ref: (1, 5) = 2*bias; o_ref: (B, 5)
    s = x_ref[...] + y_ref[...]                       # VPU add; fuses the two matmuls
    acc = jnp.dot(s, wt_ref[...], preferred_element_type=jnp.float32)  # MXU (M,K)x(K,N)
    o_ref[...] = (acc + b2_ref[...]).astype(o_ref.dtype)


@functools.partial(jax.jit, static_argnames=())
def multiple_input_forward(x, y, weight_t, bias2_2d):
    """x, y: (10, 5, 2). weight_t: (10, 5) == W^T. bias2_2d: (1, 5) == 2*bias.

    Returns (10, 5) == linear(x.view(-1,10)) + linear(y.view(-1,10)).
    """
    # Row-major reshape matches torch .view(-1, 10); under jit this is a free bitcast.
    # Keep it here — do NOT push it into the kernel (would force a VMEM relayout).
    x_flat = x.reshape(-1, IN_FEATURES)               # (10, 10)
    y_flat = y.reshape(-1, IN_FEATURES)               # (10, 10)
    B = x_flat.shape[0]

    flops = 2 * B * IN_FEATURES * OUT_FEATURES + B * IN_FEATURES
    bytes_accessed = (
        x_flat.size + y_flat.size + weight_t.size + bias2_2d.size + B * OUT_FEATURES
    ) * 4

    # Tiny problem: no grid, no software pipeline — full-array VMEM blocks only.
    return pl.pallas_call(
        _dual_linear_kernel,
        out_shape=jax.ShapeDtypeStruct((B, OUT_FEATURES), jnp.float32),
        in_specs=[
            pl.BlockSpec(memory_space=pltpu.MemorySpace.VMEM),
            pl.BlockSpec(memory_space=pltpu.MemorySpace.VMEM),
            pl.BlockSpec(memory_space=pltpu.MemorySpace.VMEM),
            pl.BlockSpec(memory_space=pltpu.MemorySpace.VMEM),
        ],
        out_specs=pl.BlockSpec(memory_space=pltpu.MemorySpace.VMEM),
        cost_estimate=pl.CostEstimate(
            flops=flops, transcendentals=0, bytes_accessed=bytes_accessed
        ),
    )(x_flat, y_flat, weight_t, bias2_2d)


if __name__ == "__main__":
    key = jax.random.PRNGKey(0)
    kx, ky, kw, kb = jax.random.split(key, 4)

    # Deterministic parameter init mimicking nn.Linear(10, 5):
    # U(-1/sqrt(fan_in), 1/sqrt(fan_in))
    bound = 1.0 / (IN_FEATURES ** 0.5)
    weight = jax.random.uniform(kw, (OUT_FEATURES, IN_FEATURES),
                                jnp.float32, -bound, bound)
    bias = jax.random.uniform(kb, (OUT_FEATURES,), jnp.float32, -bound, bound)

    # Precompute ONCE at parameter-init time (off the per-call path):
    #  * transposed weight so the kernel's MXU contraction is (M,K)x(K,N),
    #  * doubled bias (linear applied to x and y share the same bias).
    weight_t = jnp.asarray(weight.T)                  # (10, 5)
    bias2_2d = (2.0 * bias).reshape(1, OUT_FEATURES)  # (1, 5)

    # Inputs matching MultipleInputModel.input_array shapes: (10, 5, 2) each.
    x = jax.random.uniform(kx, (10, 5, 2), jnp.float32)
    y = jax.random.uniform(ky, (10, 5, 2), jnp.float32)

    out = multiple_input_forward(x, y, weight_t, bias2_2d)
    out = jax.block_until_ready(out)

    # Reference check in plain JAX (same math as the PyTorch module:
    # linear(x.view(-1,10)) + linear(y.view(-1,10))).
    ref = (x.reshape(-1, 10) @ weight.T + bias) + (y.reshape(-1, 10) @ weight.T + bias)
    assert out.shape == (10, OUT_FEATURES)
    assert jnp.allclose(out, ref, atol=1e-5, rtol=1e-5)

    print("KERNEL_OK")
</pallas_src>

<mosaic_0001>
module attributes {stable_mosaic.version = 11 : i64} {
  func.func @_dual_linear_kernel(%arg0: memref<10x10xf32, #tpu.memory_space<vmem>>, %arg1: memref<10x10xf32, #tpu.memory_space<vmem>>, %arg2: memref<10x5xf32, #tpu.memory_space<vmem>>, %arg3: memref<1x5xf32, #tpu.memory_space<vmem>>, %arg4: memref<10x5xf32, #tpu.memory_space<vmem>>) attributes {dimension_semantics = [], scalar_prefetch = 0 : i64, scratch_operands = 0 : i64, tpu.core_type = #tpu.core_type<tc>} {
    %c0 = arith.constant 0 : index
    %c0_0 = arith.constant 0 : index
    %0 = vector.load %arg0[%c0, %c0_0] : memref<10x10xf32, #tpu.memory_space<vmem>>, vector<10x10xf32>
    %c0_1 = arith.constant 0 : index
    %c0_2 = arith.constant 0 : index
    %1 = vector.load %arg1[%c0_1, %c0_2] : memref<10x10xf32, #tpu.memory_space<vmem>>, vector<10x10xf32>
    %2 = arith.addf %0, %1 : vector<10x10xf32>
    %c0_3 = arith.constant 0 : index
    %c0_4 = arith.constant 0 : index
    %3 = vector.load %arg2[%c0_3, %c0_4] : memref<10x5xf32, #tpu.memory_space<vmem>>, vector<10x5xf32>
    %cst = arith.constant dense<0.000000e+00> : vector<10x5xf32>
    %4 = tpu.matmul %2, %3, %cst {dimension_numbers = #tpu.dot_dimension_numbers<[1], [0], [0], [1], [0, 0, 1, 1], [], []>} : vector<10x10xf32>, vector<10x5xf32>, vector<10x5xf32> -> vector<10x5xf32>
    %c0_5 = arith.constant 0 : index
    %c0_6 = arith.constant 0 : index
    %5 = vector.load %arg3[%c0_5, %c0_6] : memref<1x5xf32, #tpu.memory_space<vmem>>, vector<1x5xf32>
    %6 = vector.broadcast %5 : vector<1x5xf32> to vector<10x5xf32>
    %7 = arith.addf %4, %6 : vector<10x5xf32>
    %c0_7 = arith.constant 0 : index
    %c0_8 = arith.constant 0 : index
    %8 = vector.load %arg4[%c0_7, %c0_8] : memref<10x5xf32, #tpu.memory_space<vmem>>, vector<10x5xf32>
    tpu.vector_store %arg4[%c0_7, %c0_8], %7 {strides = array<i32>} : memref<10x5xf32, #tpu.memory_space<vmem>>, vector<10x5xf32>,
    return
  }
}

</mosaic_0001>

<bundles_post_ra>
// kernel: multiple_input_forward.1
= control target key start
LH: loop header
LB: loop body
LE: loop exit
PB: predicated region body
PF: predicated region fallthrough
CT: control target
= control target key end

     0   :  { %vm39_vm0 = vcmask 1041408   ;;  %vm148_vm1 = vmmov 1   ;;  %vm32_vm3 = vcmask 80896   ;;  %vm120_vm4 = vcmask 33792   ;;  %s201_s2 = inlined_call_operand.vmem [shape: f32[10,5], index: 2, kind: input, shape index: {}]   ;;  %s202_s0 = inlined_call_operand.vmem [shape: f32[10,10], index: 0, kind: input, shape index: {}]   ;;  %s203_s1 = inlined_call_operand.vmem [shape: f32[10,10], index: 1, kind: input, shape index: {}]   ;;  %s204_s3 = inlined_call_operand.vmem [shape: f32[1,5], index: 3, kind: input, shape index: {}]   ;;  %s205_s4 = inlined_call_operand.vmem [shape: f32[10,5], index: 4, kind: output, shape index: {}]  }
   0x1   :  { %v23_v0 = vld [vmem:[%s201_s2] sm:$0xff]  ;;  %v24_v1 = vld [vmem:[%s201_s2 + $0x8] sm:$0x3]  ;;  %vm142_vm2 = vmpackc.low %vm39_vm0, %vm148_vm1  ;;  %vm118_vm5 = vcmask 39936  }
   0x2   :  { %v141_v2 = vpack.c.bf16 %v24_v1, %v23_v0  ;;  %v17_v3 = vld [vmem:[%s202_s0] sm:$0xff]  ;;  %v18_v4 = vld [vmem:[%s202_s0 + $0x8] sm:$0x3] }
   0x3   :  { %v19_v5 = vld [vmem:[%s203_s1] sm:$0xff]  ;;  %v20_v6 = vld [vmem:[%s203_s1 + $0x8] sm:$0x3] }
   0x4   :  { %v21_v7 = vadd.f32 %v19_v5, %v17_v3  ;;  %143 = vmatprep.subr.msk.bf16.mxu0 %vm142_vm2, %v141_v2  ;;  %v22_v8 = vadd.f32 %v20_v6, %v18_v4  ;;  %v126_v9 = vld [vmem:[%s204_s3] ss:$0 sm:$0xff] }
   0x5   :  { %146 = vmatpush3.bf16.msk.msra.mxu0 %vm142_vm2, %v141_v2 }
   0x6   :  { %138 = vmatprep.mubr.msk.f32.mxu0 %vm32_vm3, %v21_v7 }
   0x8   :  { %139 = vmatmul.mubr.msk.f32.vlgmr.msra.gmra.mrb[0].mxu0 %vm32_vm3, %v22_v8 }
  0xdb   :  { %v140_v10 = vpop.f32.mrb[0].mxu0 }
  0xdc   :  { %v115_v11 = vadd.f32 %v140_v10, %v126_v9  ;;  %v109_v12 = vpop.f32.mrb[1].mxu0 }
  0xdd   :  { %v110_v13 = vadd.f32 %v126_v9, %v109_v12 }
  0xde   :  { %121 = vst.msk [vmem:[%s205_s4 + $0x8] sm:$0x3] %vm120_vm4, %v115_v11 }
  0xdf   :  { %119 = vst.msk [vmem:[%s205_s4] sm:$0xff] %vm118_vm5, %v110_v13 }

</bundles_post_ra>
